<compile_context>
chip_gen: v6e
topology: v6e:2x2x1
jax: 0.10.0
libtpu: 0.0.40
codegen_flags: <defaults>
</compile_context>

<pallas_src>
import functools

import jax
import jax.numpy as jnp
from jax import lax
from jax.experimental import pallas as pl
from jax.experimental.pallas import tpu as pltpu


def _block_type_b_kernel(x_ref, mask_ref, w1_ref, s1_ref, b1_ref,
                         w2_ref, s2_ref, b2_ref, o_ref, x3_ref, *, wp):
    """One batch element per grid step, lane-dense (C, L) layout.

    x_ref   : (1, Cin, L)      bf16  zero-padded input, spatial flattened to L lanes
    mask_ref: (1, L)           f32   1.0 on interior (non-halo) positions, else 0.0
    w1_ref  : (3, Cin, 3*Cin)  bf16  conv1 weights, [kh, co, kw*Cin + ci]
    s1_ref  : (Cin, 1)         f32   folded BN1 scale
    b1_ref  : (Cin, 1)         f32   folded BN1 bias (includes conv1 bias)
    w2_ref  : (3, Cout, 3*Cin) bf16
    s2_ref  : (Cout, 1)        f32
    b2_ref  : (Cout, 1)        f32
    o_ref   : (1, Cout, L)     f32   output in the same padded-flat layout
    x3_ref  : VMEM scratch (3*Cin, L) f32 -- column-tap (im2col) buffer
    wp      : static padded row width (W + 2)
    """
    cdt = w1_ref.dtype                       # matmul compute dtype (bf16)
    x = x_ref[0].astype(jnp.float32)         # (Cin, L)
    mask = mask_ref[...]                     # (1, L)

    def shift(v, d):
        # result[:, j] = v[:, j + d]; wrap-around only lands on halo / tail lanes
        # which are masked (or sliced away by the wrapper).
        return pltpu.roll(v, (-d) % v.shape[1], axis=1)

    def conv3x3(inp, w_ref):
        # inp: (C, L) f32. Gather the 3 column taps along the contraction axis
        # (K = 3*C) -> 3 deep matmuls instead of 9 short-K ones, no strided copies.
        c = inp.shape[0]
        x3_ref[0:c, :] = shift(inp, -1)          # kw = 0 tap
        x3_ref[c:2 * c, :] = inp                 # kw = 1 tap
        x3_ref[2 * c:3 * c, :] = shift(inp, 1)   # kw = 2 tap
        x3 = x3_ref[...].astype(cdt)             # (3C, L)
        y0 = jnp.dot(w_ref[0], x3, preferred_element_type=jnp.float32)
        y1 = jnp.dot(w_ref[1], x3, preferred_element_type=jnp.float32)
        y2 = jnp.dot(w_ref[2], x3, preferred_element_type=jnp.float32)
        # Row taps: out[:, j] = y0[:, j - wp] + y1[:, j] + y2[:, j + wp]
        return shift(y0, -wp) + y1 + shift(y2, wp)

    # conv1 + BN1 + ReLU + residual; halo zeroed (= conv2's implicit zero padding)
    h = conv3x3(x, w1_ref)
    h = jnp.maximum(h * s1_ref[...] + b1_ref[...], 0.0)
    h = (h + x) * mask

    # conv2 + BN2 + ReLU
    z = conv3x3(h, w2_ref)
    z = jnp.maximum(z * s2_ref[...] + b2_ref[...], 0.0)
    o_ref[0] = (z * mask).astype(o_ref.dtype)


@functools.partial(jax.jit, static_argnames=("eps", "compute_dtype"))
def block_type_b_pallas(x_nchw, w1_oihw, b1, g1, be1, m1, v1,
                        w2_oihw, b2, g2, be2, m2, v2,
                        eps=1e-5, compute_dtype=jnp.bfloat16):
    N, Cin, H, W = x_nchw.shape
    Cout = w2_oihw.shape[0]
    Hp, Wp = H + 2, W + 2
    L_raw = Hp * Wp
    L = ((L_raw + 127) // 128) * 128     # lane-dense: pad flat spatial axis to 128

    # NCHW -> zero-pad spatial halo -> flatten spatial -> pad to L lanes (bf16)
    xpad = jnp.pad(x_nchw, ((0, 0), (0, 0), (1, 1), (1, 1)))
    xflat = jnp.pad(xpad.reshape(N, Cin, L_raw),
                    ((0, 0), (0, 0), (0, L - L_raw))).astype(compute_dtype)

    # interior mask: 1.0 at padded positions (r, c) with 1<=r<=H, 1<=c<=W
    idx = jnp.arange(L, dtype=jnp.int32)
    r, c = idx // Wp, idx % Wp
    mask = (((r >= 1) & (r <= H) & (c >= 1) & (c <= W))
            .astype(jnp.float32).reshape(1, L))

    # OIHW -> (kh, co, kw*Cin + ci), compute dtype
    def pack_w(w):
        o, i = w.shape[0], w.shape[1]
        return (jnp.transpose(w, (2, 0, 3, 1))       # (kh, o, kw, i)
                .reshape(3, o, 3 * i).astype(compute_dtype))

    w1_k, w2_k = pack_w(w1_oihw), pack_w(w2_oihw)

    # fold eval-mode BN (+ conv bias) into per-channel scale / bias (f32, (C, 1))
    def fold(b, g, be, m, v):
        inv = (g / jnp.sqrt(v + eps)).astype(jnp.float32)
        return inv.reshape(-1, 1), (be + (b - m) * inv).astype(jnp.float32).reshape(-1, 1)

    s1, bb1 = fold(b1, g1, be1, m1, v1)
    s2, bb2 = fold(b2, g2, be2, m2, v2)

    # explicit VMEM budget: double-buffered blocks + weights + scratch + live f32 temps
    itm = jnp.dtype(compute_dtype).itemsize
    est = (2 * Cin * L * itm                       # input block x2 buffers
           + 2 * Cout * L * 4                      # output block x2 buffers
           + 2 * (w1_k.size + w2_k.size) * itm     # weights x2 buffers
           + 2 * L * 4                             # mask
           + 3 * Cin * L * 4                       # im2col scratch
           + (4 * Cin + 4 * Cout) * L * 4)         # live f32 temporaries
    vmem_limit = int(min(64 * 1024 * 1024, max(32 * 1024 * 1024, 2 * est)))

    out_flat = pl.pallas_call(
        functools.partial(_block_type_b_kernel, wp=Wp),
        out_shape=jax.ShapeDtypeStruct((N, Cout, L), jnp.float32),
        grid_spec=pltpu.PrefetchScalarGridSpec(
            num_scalar_prefetch=0,
            grid=(N,),
            in_specs=[
                pl.BlockSpec((1, Cin, L), lambda n: (n, 0, 0)),
                pl.BlockSpec((1, L), lambda n: (0, 0)),
                pl.BlockSpec((3, Cin, 3 * Cin), lambda n: (0, 0, 0)),
                pl.BlockSpec((Cin, 1), lambda n: (0, 0)),
                pl.BlockSpec((Cin, 1), lambda n: (0, 0)),
                pl.BlockSpec((3, Cout, 3 * Cin), lambda n: (0, 0, 0)),
                pl.BlockSpec((Cout, 1), lambda n: (0, 0)),
                pl.BlockSpec((Cout, 1), lambda n: (0, 0)),
            ],
            out_specs=pl.BlockSpec((1, Cout, L), lambda n: (n, 0, 0)),
            scratch_shapes=[pltpu.VMEM((3 * Cin, L), jnp.float32)],
        ),
        compiler_params=pltpu.CompilerParams(
            dimension_semantics=("parallel",),   # shard batch across TCs on v7x
            vmem_limit_bytes=vmem_limit,
        ),
    )(xflat, mask, w1_k, s1, bb1, w2_k, s2, bb2)

    # padded-flat output is already channel-major (NCHW) -> just crop the halo
    out = out_flat[:, :, :L_raw].reshape(N, Cout, Hp, Wp)[:, :, 1:1 + H, 1:1 + W]
    return out


def _reference(x_nchw, w1, b1, g1, be1, m1, v1, w2, b2, g2, be2, m2, v2, eps=1e-5):
    """Pure-JAX reference mirroring the PyTorch forward (eval-mode BN)."""
    dn = lax.conv_dimension_numbers(x_nchw.shape, w1.shape, ("NCHW", "OIHW", "NCHW"))

    def conv_bn_relu(x, w, b, g, be, m, v):
        y = lax.conv_general_dilated(x, w, (1, 1), ((1, 1), (1, 1)),
                                     dimension_numbers=dn)
        y = y + b[None, :, None, None]
        y = (y - m[None, :, None, None]) * (g / jnp.sqrt(v + eps))[None, :, None, None] \
            + be[None, :, None, None]
        return jnp.maximum(y, 0.0)

    h = conv_bn_relu(x_nchw, w1, b1, g1, be1, m1, v1) + x_nchw
    return conv_bn_relu(h, w2, b2, g2, be2, m2, v2)


if __name__ == "__main__":
    key = jax.random.PRNGKey(0)
    N, Cin, Cout, H, W = 2, 4, 8, 16, 16
    ks = jax.random.split(key, 13)

    x = jax.random.normal(ks[0], (N, Cin, H, W), jnp.float32)

    # conv1 / bn1 params
    w1 = 0.1 * jax.random.normal(ks[1], (Cin, Cin, 3, 3), jnp.float32)
    b1 = 0.1 * jax.random.normal(ks[2], (Cin,), jnp.float32)
    g1 = 1.0 + 0.1 * jax.random.normal(ks[3], (Cin,), jnp.float32)
    be1 = 0.1 * jax.random.normal(ks[4], (Cin,), jnp.float32)
    m1 = 0.1 * jax.random.normal(ks[5], (Cin,), jnp.float32)
    v1 = jnp.abs(1.0 + 0.1 * jax.random.normal(ks[6], (Cin,), jnp.float32))

    # conv2 / bn2 params
    w2 = 0.1 * jax.random.normal(ks[7], (Cout, Cin, 3, 3), jnp.float32)
    b2 = 0.1 * jax.random.normal(ks[8], (Cout,), jnp.float32)
    g2 = 1.0 + 0.1 * jax.random.normal(ks[9], (Cout,), jnp.float32)
    be2 = 0.1 * jax.random.normal(ks[10], (Cout,), jnp.float32)
    m2 = 0.1 * jax.random.normal(ks[11], (Cout,), jnp.float32)
    v2 = jnp.abs(1.0 + 0.05 * jax.random.normal(ks[12], (Cout,), jnp.float32))

    out = block_type_b_pallas(x, w1, b1, g1, be1, m1, v1,
                              w2, b2, g2, be2, m2, v2)
    out = jax.block_until_ready(out)
    assert out.shape == (N, Cout, H, W), out.shape

    # Reference with bf16-quantized activations/weights (the kernel runs its matmuls
    # in bf16 with f32 accumulation); BN scale/bias stay f32.
    q = lambda a: a.astype(jnp.bfloat16).astype(jnp.float32)
    ref = _reference(q(x), q(w1), b1, g1, be1, m1, v1,
                     q(w2), b2, g2, be2, m2, v2)
    err = float(jnp.max(jnp.abs(out - ref)))
    assert err < 5e-2, err

    print("KERNEL_OK")
</pallas_src>

<mosaic_0001>
module attributes {stable_mosaic.version = 11 : i64} {
  func.func @_block_type_b_kernel(%arg0: i32, %arg1: memref<1x4x384xbf16, #tpu.memory_space<vmem>>, %arg2: memref<1x384xf32, #tpu.memory_space<vmem>>, %arg3: memref<3x4x12xbf16, #tpu.memory_space<vmem>>, %arg4: memref<4x1xf32, #tpu.memory_space<vmem>>, %arg5: memref<4x1xf32, #tpu.memory_space<vmem>>, %arg6: memref<3x8x12xbf16, #tpu.memory_space<vmem>>, %arg7: memref<8x1xf32, #tpu.memory_space<vmem>>, %arg8: memref<8x1xf32, #tpu.memory_space<vmem>>, %arg9: memref<1x8x384xf32, #tpu.memory_space<vmem>>, %arg10: memref<12x384xf32, #tpu.memory_space<vmem>>) attributes {dimension_semantics = [#tpu.dimension_semantics<parallel>], iteration_bounds = array<i64: 2>, scalar_prefetch = 0 : i64, scratch_operands = 1 : i64, tpu.core_type = #tpu.core_type<tc>, window_params = [{transform_indices = @transform_0, window_bounds = array<i64: 1, 4, 384>}, {pipeline_mode = #tpu.pipeline_mode<synchronous>, transform_indices = @transform_1, window_bounds = array<i64: 1, 384>}, {pipeline_mode = #tpu.pipeline_mode<synchronous>, transform_indices = @transform_2, window_bounds = array<i64: 3, 4, 12>}, {pipeline_mode = #tpu.pipeline_mode<synchronous>, transform_indices = @transform_3, window_bounds = array<i64: 4, 1>}, {pipeline_mode = #tpu.pipeline_mode<synchronous>, transform_indices = @transform_4, window_bounds = array<i64: 4, 1>}, {pipeline_mode = #tpu.pipeline_mode<synchronous>, transform_indices = @transform_5, window_bounds = array<i64: 3, 8, 12>}, {pipeline_mode = #tpu.pipeline_mode<synchronous>, transform_indices = @transform_6, window_bounds = array<i64: 8, 1>}, {pipeline_mode = #tpu.pipeline_mode<synchronous>, transform_indices = @transform_7, window_bounds = array<i64: 8, 1>}, {transform_indices = @transform_8, window_bounds = array<i64: 1, 8, 384>}]} {
    %c0 = arith.constant 0 : index
    %c0_0 = arith.constant 0 : index
    %c0_1 = arith.constant 0 : index
    %0 = vector.load %arg1[%c0, %c0_0, %c0_1] : memref<1x4x384xbf16, #tpu.memory_space<vmem>>, vector<1x4x384xbf16>
    %1 = vector.shape_cast %0 : vector<1x4x384xbf16> to vector<4x384xbf16>
    %2 = arith.extf %1 : vector<4x384xbf16> to vector<4x384xf32>
    %c0_2 = arith.constant 0 : index
    %c0_3 = arith.constant 0 : index
    %3 = vector.load %arg2[%c0_2, %c0_3] : memref<1x384xf32, #tpu.memory_space<vmem>>, vector<1x384xf32>
    %c1_i32 = arith.constant 1 : i32
    %4 = tpu.dynamic_rotate %2 by %c1_i32 dim 1 : vector<4x384xf32>, i32 -> vector<4x384xf32>
    %c0_4 = arith.constant 0 : index
    %c0_5 = arith.constant 0 : index
    %5 = vector.load %arg10[%c0_4, %c0_5] : memref<12x384xf32, #tpu.memory_space<vmem>>, vector<4x384xf32>
    tpu.vector_store %arg10[%c0_4, %c0_5], %4 {strides = array<i32>} : memref<12x384xf32, #tpu.memory_space<vmem>>, vector<4x384xf32>,
    %c4 = arith.constant 4 : index
    %c0_6 = arith.constant 0 : index
    %6 = vector.load %arg10[%c4, %c0_6] : memref<12x384xf32, #tpu.memory_space<vmem>>, vector<4x384xf32>
    tpu.vector_store %arg10[%c4, %c0_6], %2 {strides = array<i32>} : memref<12x384xf32, #tpu.memory_space<vmem>>, vector<4x384xf32>,
    %c383_i32 = arith.constant 383 : i32
    %7 = tpu.dynamic_rotate %2 by %c383_i32 dim 1 : vector<4x384xf32>, i32 -> vector<4x384xf32>
    %c8 = arith.constant 8 : index
    %c0_7 = arith.constant 0 : index
    %8 = vector.load %arg10[%c8, %c0_7] : memref<12x384xf32, #tpu.memory_space<vmem>>, vector<4x384xf32>
    tpu.vector_store %arg10[%c8, %c0_7], %7 {strides = array<i32>} : memref<12x384xf32, #tpu.memory_space<vmem>>, vector<4x384xf32>,
    %c0_8 = arith.constant 0 : index
    %c0_9 = arith.constant 0 : index
    %9 = vector.load %arg10[%c0_8, %c0_9] : memref<12x384xf32, #tpu.memory_space<vmem>>, vector<12x384xf32>
    %10 = arith.truncf %9 : vector<12x384xf32> to vector<12x384xbf16>
    %c0_10 = arith.constant 0 : index
    %c0_11 = arith.constant 0 : index
    %c0_12 = arith.constant 0 : index
    %11 = vector.load %arg3[%c0_10, %c0_11, %c0_12] : memref<3x4x12xbf16, #tpu.memory_space<vmem>>, vector<1x4x12xbf16>
    %12 = vector.shape_cast %11 : vector<1x4x12xbf16> to vector<4x12xbf16>
    %cst = arith.constant dense<0.000000e+00> : vector<4x384xf32>
    %13 = tpu.matmul %12, %10, %cst {dimension_numbers = #tpu.dot_dimension_numbers<[1], [0], [0], [1], [0, 0, 1, 1], [], []>} : vector<4x12xbf16>, vector<12x384xbf16>, vector<4x384xf32> -> vector<4x384xf32>
    %c1 = arith.constant 1 : index
    %c0_13 = arith.constant 0 : index
    %c0_14 = arith.constant 0 : index
    %14 = vector.load %arg3[%c1, %c0_13, %c0_14] : memref<3x4x12xbf16, #tpu.memory_space<vmem>>, vector<1x4x12xbf16>
    %15 = vector.shape_cast %14 : vector<1x4x12xbf16> to vector<4x12xbf16>
    %cst_15 = arith.constant dense<0.000000e+00> : vector<4x384xf32>
    %16 = tpu.matmul %15, %10, %cst_15 {dimension_numbers = #tpu.dot_dimension_numbers<[1], [0], [0], [1], [0, 0, 1, 1], [], []>} : vector<4x12xbf16>, vector<12x384xbf16>, vector<4x384xf32> -> vector<4x384xf32>
    %c2 = arith.constant 2 : index
    %c0_16 = arith.constant 0 : index
    %c0_17 = arith.constant 0 : index
    %17 = vector.load %arg3[%c2, %c0_16, %c0_17] : memref<3x4x12xbf16, #tpu.memory_space<vmem>>, vector<1x4x12xbf16>
    %18 = vector.shape_cast %17 : vector<1x4x12xbf16> to vector<4x12xbf16>
    %cst_18 = arith.constant dense<0.000000e+00> : vector<4x384xf32>
    %19 = tpu.matmul %18, %10, %cst_18 {dimension_numbers = #tpu.dot_dimension_numbers<[1], [0], [0], [1], [0, 0, 1, 1], [], []>} : vector<4x12xbf16>, vector<12x384xbf16>, vector<4x384xf32> -> vector<4x384xf32>
    %c18_i32 = arith.constant 18 : i32
    %20 = tpu.dynamic_rotate %13 by %c18_i32 dim 1 : vector<4x384xf32>, i32 -> vector<4x384xf32>
    %21 = arith.addf %20, %16 : vector<4x384xf32>
    %c366_i32 = arith.constant 366 : i32
    %22 = tpu.dynamic_rotate %19 by %c366_i32 dim 1 : vector<4x384xf32>, i32 -> vector<4x384xf32>
    %23 = arith.addf %21, %22 : vector<4x384xf32>
    %c0_19 = arith.constant 0 : index
    %c0_20 = arith.constant 0 : index
    %24 = vector.load %arg4[%c0_19, %c0_20] : memref<4x1xf32, #tpu.memory_space<vmem>>, vector<4x1xf32>
    %25 = vector.broadcast %24 : vector<4x1xf32> to vector<4x384xf32>
    %26 = arith.mulf %23, %25 : vector<4x384xf32>
    %c0_21 = arith.constant 0 : index
    %c0_22 = arith.constant 0 : index
    %27 = vector.load %arg5[%c0_21, %c0_22] : memref<4x1xf32, #tpu.memory_space<vmem>>, vector<4x1xf32>
    %28 = vector.broadcast %27 : vector<4x1xf32> to vector<4x384xf32>
    %29 = arith.addf %26, %28 : vector<4x384xf32>
    %cst_23 = arith.constant 0.000000e+00 : f32
    %30 = vector.broadcast %cst_23 : f32 to vector<4x384xf32>
    %31 = arith.maximumf %29, %30 : vector<4x384xf32>
    %32 = arith.addf %31, %2 : vector<4x384xf32>
    %33 = vector.broadcast %3 : vector<1x384xf32> to vector<4x384xf32>
    %34 = arith.mulf %32, %33 : vector<4x384xf32>
    %c1_i32_24 = arith.constant 1 : i32
    %35 = tpu.dynamic_rotate %34 by %c1_i32_24 dim 1 : vector<4x384xf32>, i32 -> vector<4x384xf32>
    %c0_25 = arith.constant 0 : index
    %c0_26 = arith.constant 0 : index
    %36 = vector.load %arg10[%c0_25, %c0_26] : memref<12x384xf32, #tpu.memory_space<vmem>>, vector<4x384xf32>
    tpu.vector_store %arg10[%c0_25, %c0_26], %35 {strides = array<i32>} : memref<12x384xf32, #tpu.memory_space<vmem>>, vector<4x384xf32>,
    %c4_27 = arith.constant 4 : index
    %c0_28 = arith.constant 0 : index
    %37 = vector.load %arg10[%c4_27, %c0_28] : memref<12x384xf32, #tpu.memory_space<vmem>>, vector<4x384xf32>
    tpu.vector_store %arg10[%c4_27, %c0_28], %34 {strides = array<i32>} : memref<12x384xf32, #tpu.memory_space<vmem>>, vector<4x384xf32>,
    %c383_i32_29 = arith.constant 383 : i32
    %38 = tpu.dynamic_rotate %34 by %c383_i32_29 dim 1 : vector<4x384xf32>, i32 -> vector<4x384xf32>
    %c8_30 = arith.constant 8 : index
    %c0_31 = arith.constant 0 : index
    %39 = vector.load %arg10[%c8_30, %c0_31] : memref<12x384xf32, #tpu.memory_space<vmem>>, vector<4x384xf32>
    tpu.vector_store %arg10[%c8_30, %c0_31], %38 {strides = array<i32>} : memref<12x384xf32, #tpu.memory_space<vmem>>, vector<4x384xf32>,
    %c0_32 = arith.constant 0 : index
    %c0_33 = arith.constant 0 : index
    %40 = vector.load %arg10[%c0_32, %c0_33] : memref<12x384xf32, #tpu.memory_space<vmem>>, vector<12x384xf32>
    %41 = arith.truncf %40 : vector<12x384xf32> to vector<12x384xbf16>
    %c0_34 = arith.constant 0 : index
    %c0_35 = arith.constant 0 : index
    %c0_36 = arith.constant 0 : index
    %42 = vector.load %arg6[%c0_34, %c0_35, %c0_36] : memref<3x8x12xbf16, #tpu.memory_space<vmem>>, vector<1x8x12xbf16>
    %43 = vector.shape_cast %42 : vector<1x8x12xbf16> to vector<8x12xbf16>
    %cst_37 = arith.constant dense<0.000000e+00> : vector<8x384xf32>
    %44 = tpu.matmul %43, %41, %cst_37 {dimension_numbers = #tpu.dot_dimension_numbers<[1], [0], [0], [1], [0, 0, 1, 1], [], []>} : vector<8x12xbf16>, vector<12x384xbf16>, vector<8x384xf32> -> vector<8x384xf32>
    %c1_38 = arith.constant 1 : index
    %c0_39 = arith.constant 0 : index
    %c0_40 = arith.constant 0 : index
    %45 = vector.load %arg6[%c1_38, %c0_39, %c0_40] : memref<3x8x12xbf16, #tpu.memory_space<vmem>>, vector<1x8x12xbf16>
    %46 = vector.shape_cast %45 : vector<1x8x12xbf16> to vector<8x12xbf16>
    %cst_41 = arith.constant dense<0.000000e+00> : vector<8x384xf32>
    %47 = tpu.matmul %46, %41, %cst_41 {dimension_numbers = #tpu.dot_dimension_numbers<[1], [0], [0], [1], [0, 0, 1, 1], [], []>} : vector<8x12xbf16>, vector<12x384xbf16>, vector<8x384xf32> -> vector<8x384xf32>
    %c2_42 = arith.constant 2 : index
    %c0_43 = arith.constant 0 : index
    %c0_44 = arith.constant 0 : index
    %48 = vector.load %arg6[%c2_42, %c0_43, %c0_44] : memref<3x8x12xbf16, #tpu.memory_space<vmem>>, vector<1x8x12xbf16>
    %49 = vector.shape_cast %48 : vector<1x8x12xbf16> to vector<8x12xbf16>
    %cst_45 = arith.constant dense<0.000000e+00> : vector<8x384xf32>
    %50 = tpu.matmul %49, %41, %cst_45 {dimension_numbers = #tpu.dot_dimension_numbers<[1], [0], [0], [1], [0, 0, 1, 1], [], []>} : vector<8x12xbf16>, vector<12x384xbf16>, vector<8x384xf32> -> vector<8x384xf32>
    %c18_i32_46 = arith.constant 18 : i32
    %51 = tpu.dynamic_rotate %44 by %c18_i32_46 dim 1 : vector<8x384xf32>, i32 -> vector<8x384xf32>
    %52 = arith.addf %51, %47 : vector<8x384xf32>
    %c366_i32_47 = arith.constant 366 : i32
    %53 = tpu.dynamic_rotate %50 by %c366_i32_47 dim 1 : vector<8x384xf32>, i32 -> vector<8x384xf32>
    %54 = arith.addf %52, %53 : vector<8x384xf32>
    %c0_48 = arith.constant 0 : index
    %c0_49 = arith.constant 0 : index
    %55 = vector.load %arg7[%c0_48, %c0_49] : memref<8x1xf32, #tpu.memory_space<vmem>>, vector<8x1xf32>
    %56 = vector.broadcast %55 : vector<8x1xf32> to vector<8x384xf32>
    %57 = arith.mulf %54, %56 : vector<8x384xf32>
    %c0_50 = arith.constant 0 : index
    %c0_51 = arith.constant 0 : index
    %58 = vector.load %arg8[%c0_50, %c0_51] : memref<8x1xf32, #tpu.memory_space<vmem>>, vector<8x1xf32>
    %59 = vector.broadcast %58 : vector<8x1xf32> to vector<8x384xf32>
    %60 = arith.addf %57, %59 : vector<8x384xf32>
    %cst_52 = arith.constant 0.000000e+00 : f32
    %61 = vector.broadcast %cst_52 : f32 to vector<8x384xf32>
    %62 = arith.maximumf %60, %61 : vector<8x384xf32>
    %63 = vector.broadcast %3 : vector<1x384xf32> to vector<8x384xf32>
    %64 = arith.mulf %62, %63 : vector<8x384xf32>
    %c0_53 = arith.constant 0 : index
    %c0_54 = arith.constant 0 : index
    %c0_55 = arith.constant 0 : index
    %65 = vector.load %arg9[%c0_53, %c0_54, %c0_55] : memref<1x8x384xf32, #tpu.memory_space<vmem>>, vector<1x8x384xf32>
    %66 = vector.shape_cast %65 : vector<1x8x384xf32> to vector<8x384xf32>
    %67 = vector.shape_cast %64 : vector<8x384xf32> to vector<1x8x384xf32>
    tpu.vector_store %arg9[%c0_53, %c0_54, %c0_55], %67 {strides = array<i32>} : memref<1x8x384xf32, #tpu.memory_space<vmem>>, vector<1x8x384xf32>,
    return
  }
  func.func @transform_0(%arg0: i32) -> (i32, i32, i32) {
    %c0_i32 = arith.constant 0 : i32
    %c0_i32_0 = arith.constant 0 : i32
    %c0_i32_1 = arith.constant 0 : i32
    return %arg0, %c0_i32, %c0_i32_0 : i32, i32, i32
  }
  func.func @transform_1(%arg0: i32) -> (i32, i32) {
    %c0_i32 = arith.constant 0 : i32
    %c0_i32_0 = arith.constant 0 : i32
    %c0_i32_1 = arith.constant 0 : i32
    return %c0_i32, %c0_i32_0 : i32, i32
  }
  func.func @transform_2(%arg0: i32) -> (i32, i32, i32) {
    %c0_i32 = arith.constant 0 : i32
    %c0_i32_0 = arith.constant 0 : i32
    %c0_i32_1 = arith.constant 0 : i32
    %c0_i32_2 = arith.constant 0 : i32
    return %c0_i32, %c0_i32_0, %c0_i32_1 : i32, i32, i32
  }
  func.func @transform_3(%arg0: i32) -> (i32, i32) {
    %c0_i32 = arith.constant 0 : i32
    %c0_i32_0 = arith.constant 0 : i32
    %c0_i32_1 = arith.constant 0 : i32
    return %c0_i32, %c0_i32_0 : i32, i32
  }
  func.func @transform_4(%arg0: i32) -> (i32, i32) {
    %c0_i32 = arith.constant 0 : i32
    %c0_i32_0 = arith.constant 0 : i32
    %c0_i32_1 = arith.constant 0 : i32
    return %c0_i32, %c0_i32_0 : i32, i32
  }
  func.func @transform_5(%arg0: i32) -> (i32, i32, i32) {
    %c0_i32 = arith.constant 0 : i32
    %c0_i32_0 = arith.constant 0 : i32
    %c0_i32_1 = arith.constant 0 : i32
    %c0_i32_2 = arith.constant 0 : i32
    return %c0_i32, %c0_i32_0, %c0_i32_1 : i32, i32, i32
  }
  func.func @transform_6(%arg0: i32) -> (i32, i32) {
    %c0_i32 = arith.constant 0 : i32
    %c0_i32_0 = arith.constant 0 : i32
    %c0_i32_1 = arith.constant 0 : i32
    return %c0_i32, %c0_i32_0 : i32, i32
  }
  func.func @transform_7(%arg0: i32) -> (i32, i32) {
    %c0_i32 = arith.constant 0 : i32
    %c0_i32_0 = arith.constant 0 : i32
    %c0_i32_1 = arith.constant 0 : i32
    return %c0_i32, %c0_i32_0 : i32, i32
  }
  func.func @transform_8(%arg0: i32) -> (i32, i32, i32) {
    %c0_i32 = arith.constant 0 : i32
    %c0_i32_0 = arith.constant 0 : i32
    %c0_i32_1 = arith.constant 0 : i32
    return %arg0, %c0_i32, %c0_i32_0 : i32, i32, i32
  }
}

</mosaic_0001>

<bundles_post_ra>
// kernel: block_type_b_pallas.1
= control target key start
LH: loop header
LB: loop body
LE: loop exit
PB: predicated region body
PF: predicated region fallthrough
CT: control target
= control target key end

     0   :  { %s1281_s27 = smov 0   ;;  %s1493_s0 = inlined_call_operand.vmem [shape: bf16[2,4,384], index: 0, kind: input, shape index: {}]   ;;  %s1494_s1 = inlined_call_operand.vmem [shape: f32[1,384], index: 1, kind: input, shape index: {}]   ;;  %s1495_s2 = inlined_call_operand.vmem [shape: bf16[3,4,12], index: 2, kind: input, shape index: {}]   ;;  %s1496_s3 = inlined_call_operand.vmem [shape: f32[4,1], index: 3, kind: input, shape index: {}]   ;;  %s1497_s4 = inlined_call_operand.vmem [shape: f32[4,1], index: 4, kind: input, shape index: {}]   ;;  %s1498_s5 = inlined_call_operand.vmem [shape: bf16[3,8,12], index: 5, kind: input, shape index: {}]   ;;  %s1499_s6 = inlined_call_operand.vmem [shape: f32[8,1], index: 6, kind: input, shape index: {}]   ;;  %s1500_s7 = inlined_call_operand.vmem [shape: f32[8,1], index: 7, kind: input, shape index: {}]   ;;  %s1501_s8 = inlined_call_operand.vmem [shape: f32[2,8,384], index: 8, kind: output, shape index: {}]  }
   0x1 LB: > { %s1113_s28 = sadd.s32 4294967295, %s1227_s27   ;;  %p1117_p0 = scmp.ge.s32.totalorder %s1227_s27, 1  ;;  %s1227_s27 = sphi %s1281_s27, %s18_s27  }
   0x2   : > { %p262_p1 = scmp.lt.s32.totalorder %s1227_s27, 3 }
   0x4   : > { %p263_p2 = pnand %p1117_p0, %p262_p1 }
   0x5   : > { %p296_p3 = scmp.lt.s32.totalorder (!%p263_p2), %s1113_s28, 1  ;;  %s1229_s11 = smov (!%p263_p2), 127  }
   0x6   : > { %266 = sbr.rel (%p263_p2) target bundleno = 990 (0x3de), region = 52  ;;  %s1230_s12 = smov (!%p263_p2), 1  }
   0x7   : > { %s1234_s21 = smov (!%p263_p2), 18   ;;  %s1235_s22 = smov (!%p263_p2), 110  }
   0xb   : > { %s1503_s28 = smov (!%p296_p3, %s1113_s28), 1  ;;  %v1231_v7 = vmov 0.0   ;;  %v1232_v8 = vmov 0   ;;  %vm1233_vm0 = vmmov 0   ;;  %v653_v9 = vld [vmem:[%s1496_s3] sm:$0xf]  ;;  %v321_v10 = vlaneseq }
   0xc   : > { %s1192_s29 = smul.u32 6, %s1503_s28  ;;  %1156 = vmatprep.subr.bf16.mxu1 %v1231_v7  ;;  %406 = vmatprep.mubr.bf16.mxu0 %v1232_v8  ;;  %vm364_vm3 = vcmask 1045504   ;;  %v359_v37 = vld [vmem:[%s1495_s2] sm:$0x3]  ;;  %vm360_vm4 = vcmask 97280  }
   0xd   : > { %1158 = vmatprep.mubr.msk.bf16.mxu1 %vm1233_vm0, %v1231_v7  ;;  %1219 = vset.pattern.permute.xlu1 %v1232_v8  ;;  %v1326_v11 = vand.u32 127, %v321_v10  ;;  %v1123_v38 = vld [vmem:[%s1495_s2 + $0x2] sm:$0x3]  ;;  %v1127_v39 = vld [vmem:[%s1495_s2 + $0x4] sm:$0x3]  ;;  %s1193_s17 = smul.u32 24, %s1503_s28 }
   0xe   : > { %s300_s10 = scalar_lea.vmem %s1493_s0, %s1192_s29  ;;  %1220 = vset.pattern.permute.xlu0 %v1232_v8  ;;  %v662_v61 = vld [vmem:[%s1497_s4] sm:$0xf] }
   0xf   : > { %v307_v0 = vld [vmem:[%s300_s10] sm:$0x3f]  ;;  %vm343_vm1 = vcmp.lt.s32.totalorder %v1326_v11, 127  ;;  %vm323_vm2 = vcmp.lt.s32.totalorder %v1326_v11, 1  ;;  %vm633_vm5 = vcmp.lt.s32.totalorder %v1326_v11, 18  ;;  %vm646_vm6 = vcmp.lt.s32.totalorder %v1326_v11, 110  ;;  %s305_s20 = scalar_lea.vmem %s1501_s8, %s1193_s17 }
  0x10   : > { %v1295_v1 = vunpack.c.l.bf16 %v307_v0  ;;  %v1297_v2 = vunpack.c.h.bf16 %v307_v0 }
  0x12   : > { %v1301_v3 = vcombine.high %v1295_v1, %v1295_v1  ;;  %v330_v4 = vcombine.low %v1295_v1, %v1295_v1  ;;  %335 = vst [vmem:[#allocation2 + $0x10] sm:$0xf0] %v1295_v1  ;;  %v331_v5 = vcombine.low %v1297_v2, %v1297_v2 }
  0x14   : > { %v1214_v6 = vpack.i.bf16 %v1301_v3, %v1295_v1  ;;  %334 = vst [vmem:[#allocation2 + $0x28] sm:$0xf0] %v330_v4  ;;  %336 = vst [vmem:[#allocation2 + $0x8] sm:$0xf0] %v331_v5 }
  0x16   : > { %1215 = vrot.lane.b32.xlu1 %v1214_v6, %s1229_s11  ;;  %1210 = vrot.lane.b32.xlu0 %v1214_v6, %s1230_s12 }
  0x1a   : > { %341 = vrot.lane.b32.xlu1 %v1297_v2, %s1229_s11  ;;  %319 = vrot.lane.b32.xlu0 %v1297_v2, %s1230_s12 }
  0x1e   : > { %656 = vperm.xlu1 %1219, %v653_v9  }
  0x88   : > { %v1216_v12 = vpop.permute.xlu1 %1215  ;;  %v1211_v13 = vpop.permute.xlu0 %1210 }
  0x89   : > { %v1218_v14 = vunpack.i.h.bf16 %v1216_v12  ;;  %v1217_v15 = vunpack.i.l.bf16 %v1216_v12  ;;  %v1213_v16 = vunpack.i.h.bf16 %v1211_v13  ;;  %v1212_v17 = vunpack.i.l.bf16 %v1211_v13 }
  0x8b   : > { %v345_v18 = vsel %vm343_vm1, %v1217_v15, %v1218_v14  ;;  %v325_v19 = vsel %vm323_vm2, %v1212_v17, %v1213_v16 }
  0x8c   : > { %347 = vst [vmem:[#allocation2] sm:$0xf] %v345_v18  ;;  %328 = vst [vmem:[#allocation2 + $0x10] sm:$0xf] %v325_v19  ;;  %v342_v20 = vpop.permute.xlu1 %341  ;;  %v320_v21 = vpop.permute.xlu0 %319 }
  0x8d   : > { %v344_v22 = vsel %vm343_vm1, %v1218_v14, %v342_v20  ;;  %v346_v23 = vsel %vm343_vm1, %v342_v20, %v1217_v15  ;;  %v324_v24 = vsel %vm323_vm2, %v1213_v16, %v320_v21  ;;  %v326_v25 = vsel %vm323_vm2, %v320_v21, %v1212_v17 }
  0x8e   : > { %348 = vst [vmem:[#allocation2 + $0x18] sm:$0xf] %v344_v22  ;;  %349 = vst [vmem:[#allocation2 + $0x20] sm:$0xf] %v346_v23 }
  0x8f   : > { %327 = vst [vmem:[#allocation2 + $0x28] sm:$0xf] %v326_v25  ;;  %329 = vst [vmem:[#allocation2 + $0x8] sm:$0xf] %v324_v24  ;;  %v679_v24 = vshrl.u32 %v321_v10, 7 }
  0x93   : > { %v351_v26 = vld [vmem:[#allocation2 + $0x10] sm:$0xff]  ;;  %v353_v27 = vld [vmem:[#allocation2] sm:$0xf] }
  0x95   : > { %v354_v28 = vld [vmem:[#allocation2 + $0x18] sm:$0xf]  ;;  %v355_v33 = vld [vmem:[#allocation2 + $0x20] sm:$0xf] }
  0x96   : > { %v350_v29 = vld [vmem:[#allocation2 + $0x28] sm:$0xff]  ;;  %v357_v31 = vpack.c.bf16 %v354_v28, %v351_v26  ;;  %v688_v28 = vsub.s32 2, %v679_v24 }
  0x97   : > { %v352_v30 = vld [vmem:[#allocation2 + $0x8] sm:$0xff]  ;;  %v356_v32 = vpack.c.bf16 %v353_v27, %v350_v29  ;;  %v684_v29 = vsub.s32 1, %v679_v24 }
  0x98   : > { %v358_v34 = vpack.c.bf16 %v355_v33, %v352_v30  ;;  %1120 = vmatprep.subr.msk.bf16.mxu0 %vm364_vm3, %v357_v31  ;;  %v310_v33 = vld [vmem:[%s1494_s1] sm:$0x7] }
  0x99   : > { %v366_v35 = vsel %vm364_vm3, %v356_v32, 0  ;;  %v657_v5 = vpop.permute.xlu1 %656  ;;  %v1403_v10 = vrot.slane %v310_v33, %v684_v29 }
  0x9a   : > { %389 = vmatpush1.bf16.msra.mxu0 %v366_v35  ;;  %v372_v36 = vsel %vm364_vm3, %v358_v34, 0  ;;  %v680_v34 = vsub.s32 0, %v679_v24 }
  0x9b   : > { %1157 = vmatpush3.bf16.msra.mxu1 %v372_v36  ;;  %1124 = vmatprep.subr.msk.bf16.mxu0 %vm364_vm3, %v357_v31 }
  0x9c   : > { %1162 = vmatprep.subr.bf16.mxu1 %v1231_v7 }
  0x9d   : > { %1121 = vmatmul.mubr.msk.bf16.vlgmr.msra.gmra.mxu0 %vm360_vm4, %v359_v37 }
  0x9e   : > { %1159 = vmatmul.mubr.msk.bf16.vlgmr.msra.gmra.mxu1 %vm360_vm4, %v359_v37  ;;  %475 = vmatpush1.bf16.msra.mxu0 %v366_v35 }
  0x9f   : > { %1163 = vmatpush3.bf16.msra.mxu1 %v372_v36  ;;  %1128 = vmatprep.subr.msk.bf16.mxu0 %vm364_vm3, %v357_v31 }
  0xa0   : > { %492 = vmatprep.mubr.bf16.mxu0 %v1232_v8  ;;  %1164 = vmatprep.mubr.msk.bf16.mxu1 %vm1233_vm0, %v1231_v7 }
  0xa1   : > { %1168 = vmatprep.subr.bf16.mxu1 %v1231_v7 }
  0xa5   : > { %1125 = vmatmul.mubr.msk.bf16.vlgmr.msra.gmra.mxu0 %vm360_vm4, %v1123_v38 }
  0xa6   : > { %1165 = vmatmul.mubr.msk.bf16.vlgmr.msra.gmra.mxu1 %vm360_vm4, %v1123_v38  ;;  %561 = vmatpush1.bf16.msra.mxu0 %v366_v35 }
  0xa7   : > { %1169 = vmatpush3.bf16.msra.mxu1 %v372_v36  ;;  %578 = vmatprep.mubr.bf16.mxu0 %v1232_v8 }
  0xa8   : > { %1170 = vmatprep.mubr.msk.bf16.mxu1 %vm1233_vm0, %v1231_v7  ;;  %1174 = vmatprep.subr.bf16.mxu1 %v1231_v7 }
  0xad   : > { %1129 = vmatmul.mubr.msk.bf16.vlgmr.msra.gmra.mxu0 %vm360_vm4, %v1127_v39 }
  0xae   : > { %1171 = vmatmul.mubr.msk.bf16.vlgmr.msra.gmra.mxu1 %vm360_vm4, %v1127_v39  ;;  %786 = vmatprep.mubr.bf16.mxu0 %v1232_v8  ;;  %v1401_v39 = vrot.slane %v310_v33, %v688_v28 }
  0xaf   : > { %1176 = vmatprep.mubr.msk.bf16.mxu1 %vm1233_vm0, %v1231_v7 }
 0x15d   : > { %v408_v40 = vpop.f32.mrf.mxu0 }
 0x15e   : > { %627 = vrot.lane.b32.xlu0 %v408_v40, %s1234_s21  ;;  %v449_v41 = vpop.f32.mrf.mxu1 }
 0x15f   : > { %v410_v42 = vpop.f32.mrf.mxu0 }
 0x160   : > { %629 = vrot.lane.b32.xlu1 %v410_v42, %s1234_s21  ;;  %v1160_v43 = vpop.f32.mrf.mxu1 }
 0x161   : > { %v412_v44 = vpop.f32.mrf.mxu0  ;;  %v1405_v43 = vrot.slane %v310_v33, %v680_v34 }
 0x162   : > { %631 = vrot.lane.b32.xlu0 %v449_v41, %s1234_s21  ;;  %v452_v45 = vpop.f32.mrf.mxu1 }
 0x163   : > { %v413_v46 = vpop.f32.mrf.mxu0 }
 0x164   : > { %v1161_v47 = vpop.f32.mrf.mxu1 }
 0x165   : > { %v494_v48 = vpop.f32.mrf.mxu0 }
 0x166   : > { %v535_v49 = vpop.f32.mrf.mxu1 }
 0x167   : > { %v496_v50 = vpop.f32.mrf.mxu0 }
 0x168   : > { %v1166_v51 = vpop.f32.mrf.mxu1 }
 0x169   : > { %v498_v52 = vpop.f32.mrf.mxu0 }
 0x16a   : > { %v538_v53 = vpop.f32.mrf.mxu1 }
 0x16b   : > { %v499_v54 = vpop.f32.mrf.mxu0 }
 0x16c   : > { %v1167_v55 = vpop.f32.mrf.mxu1 }
 0x16d   : > { %v580_v56 = vpop.f32.mrf.mxu0 }
 0x16e   : > { %640 = vrot.lane.b32.xlu0 %v580_v56, %s1235_s22  ;;  %v621_v57 = vpop.f32.mrf.mxu1 }
 0x16f   : > { %v582_v58 = vpop.f32.mrf.mxu0 }
 0x170   : > { %642 = vrot.lane.b32.xlu1 %v582_v58, %s1235_s22  ;;  %v1172_v59 = vpop.f32.mrf.mxu1 }
 0x171   : > { %v584_v60 = vpop.f32.mrf.mxu0 }
 0x172   : > { %644 = vrot.lane.b32.xlu0 %v621_v57, %s1235_s22  ;;  %v624_v62 = vpop.f32.mrf.mxu1 }
 0x173   : > { %v585_v63 = vpop.f32.mrf.mxu0 }
 0x174   : > { %665 = vperm.xlu1 %1219, %v662_v61   ;;  %v1173_v0 = vpop.f32.mrf.mxu1 }
 0x1d0   : > { %v628_v4 = vpop.permute.xlu0 %627 }
 0x1d2   : > { %v630_v9 = vpop.permute.xlu1 %629 }
 0x1d3   : > { %v635_v15 = vsel %vm633_vm5, %v628_v4, %v630_v9 }
 0x1d4   : > { %v632_v6 = vpop.permute.xlu0 %631  ;;  %v638_v21 = vadd.f32 %v635_v15, %v496_v50 }
 0x1d5   : > { %v634_v16 = vsel %vm633_vm5, %v630_v9, %v632_v6  ;;  %v636_v17 = vsel %vm633_vm5, %v632_v6, %v628_v4 }
 0x1d6   : > { %v637_v22 = vadd.f32 %v636_v17, %v494_v48  ;;  %v639_v23 = vadd.f32 %v634_v16, %v535_v49  ;;  %v741_v17 = vld [vmem:[%s1498_s5] sm:$0xf] }
 0x1e0   : > { %v641_v12 = vpop.permute.xlu0 %640 }
 0x1e2   : > { %v643_v13 = vpop.permute.xlu1 %642 }
 0x1e3   : > { %v648_v18 = vsel %vm646_vm6, %v641_v12, %v643_v13 }
 0x1e4   : > { %v645_v14 = vpop.permute.xlu0 %644  ;;  %v650_v25 = vadd.f32 %v648_v18, %v637_v22  ;;  %v1134_v18 = vld [vmem:[%s1498_s5 + $0x4] sm:$0xf] }
 0x1e5   : > { %v647_v19 = vsel %vm646_vm6, %v643_v13, %v645_v14  ;;  %v649_v20 = vsel %vm646_vm6, %v645_v14, %v641_v12 }
 0x1e6   : > { %v651_v26 = vadd.f32 %v647_v19, %v638_v21  ;;  %v652_v27 = vadd.f32 %v649_v20, %v639_v23  ;;  %v659_v30 = vmul.f32 %v657_v5, %v650_v25  ;;  %v1138_v19 = vld [vmem:[%s1498_s5 + $0x8] sm:$0xf] }
 0x1e8   : > { %v660_v31 = vmul.f32 %v657_v5, %v651_v26  ;;  %v661_v32 = vmul.f32 %v657_v5, %v652_v27 }
 0x1ef   : > { %v666_v35 = vpop.permute.xlu1 %665 }
 0x1f0   : > { %v668_v36 = vadd.f32 %v666_v35, %v659_v30  ;;  %v669_v37 = vadd.f32 %v666_v35, %v660_v31  ;;  %v670_v38 = vadd.f32 %v666_v35, %v661_v32 }
 0x1f2   : > { %v671_v40 = vmax.f32 %v668_v36, 0.0  ;;  %v672_v41 = vmax.f32 %v669_v37, 0.0  ;;  %v673_v42 = vmax.f32 %v670_v38, 0.0 }
 0x1f4   : > { %v676_v44 = vadd.f32 %v673_v42, %v1297_v2  ;;  %v675_v45 = vadd.f32 %v672_v41, %v1301_v3  ;;  %v674_v46 = vadd.f32 %v671_v40, %v1295_v1  ;;  %v1031_v1 = vld [vmem:[%s1499_s6] sm:$0xff] }
 0x1f5   : > { %v1040_v40 = vld [vmem:[%s1500_s7] sm:$0xff] }
 0x1f6   : > { %v695_v47 = vmul.f32 %v1401_v39, %v676_v44  ;;  %v694_v48 = vmul.f32 %v1403_v10, %v675_v45  ;;  %v693_v49 = vmul.f32 %v1405_v43, %v674_v46 }
 0x1f8   : > { %700 = vrot.lane.b32.xlu0 %v695_v47, %s1230_s12  ;;  %v713_v50 = vrot.slane %v695_v47, 4  ;;  %698 = vrot.lane.b32.xlu1 %v694_v48, %s1230_s12  ;;  %v712_v51 = vrot.slane %v694_v48, 4  ;;  %v711_v52 = vrot.slane %v693_v49, 4 }
 0x1fa   : > { %719 = vst [vmem:[#allocation2 + $0x8] sm:$0xf0] %v713_v50  ;;  %718 = vst [vmem:[#allocation2 + $0x10] sm:$0xf0] %v712_v51 }
 0x1fb   : > { %717 = vst [vmem:[#allocation2 + $0x28] sm:$0xf0] %v711_v52 }
 0x1fc   : > { %720 = vrot.lane.b32.xlu1 %v693_v49, %s1229_s11  ;;  %696 = vrot.lane.b32.xlu0 %v693_v49, %s1230_s12 }
 0x200   : > { %724 = vrot.lane.b32.xlu1 %v695_v47, %s1229_s11  ;;  %722 = vrot.lane.b32.xlu0 %v694_v48, %s1229_s11 }
 0x204   : > { %1034 = vperm.xlu1 %1219, %v1031_v1  }
 0x26a   : > { %v701_v2 = vpop.permute.xlu0 %700  ;;  %v699_v3 = vpop.permute.xlu1 %698 }
 0x26b   : > { %v702_v53 = vsel %vm323_vm2, %v699_v3, %v701_v2 }
 0x26c   : > { %707 = vst [vmem:[#allocation2 + $0x8] sm:$0xf] %v702_v53 }
 0x26e   : > { %v721_v54 = vpop.permute.xlu1 %720  ;;  %v697_v55 = vpop.permute.xlu0 %696 }
 0x26f   : > { %v703_v56 = vsel %vm323_vm2, %v697_v55, %v699_v3  ;;  %v704_v57 = vsel %vm323_vm2, %v701_v2, %v697_v55 }
 0x270   : > { %705 = vst [vmem:[#allocation2 + $0x28] sm:$0xf] %v704_v57  ;;  %706 = vst [vmem:[#allocation2 + $0x10] sm:$0xf] %v703_v56 }
 0x272   : > { %v725_v58 = vpop.permute.xlu1 %724  ;;  %v723_v59 = vpop.permute.xlu0 %722 }
 0x273   : > { %v728_v60 = vsel %vm343_vm1, %v725_v58, %v721_v54  ;;  %v726_v61 = vsel %vm343_vm1, %v723_v59, %v725_v58  ;;  %v727_v62 = vsel %vm343_vm1, %v721_v54, %v723_v59  ;;  %v734_v0 = vld [vmem:[#allocation2 + $0x8] sm:$0xff] }
 0x274   : > { %731 = vst [vmem:[#allocation2 + $0x20] sm:$0xf] %v728_v60  ;;  %729 = vst [vmem:[#allocation2] sm:$0xf] %v727_v62 }
 0x275   : > { %730 = vst [vmem:[#allocation2 + $0x18] sm:$0xf] %v726_v61 }
 0x277   : > { %v733_v63 = vld [vmem:[#allocation2 + $0x10] sm:$0xff]  ;;  %v732_v4 = vld [vmem:[#allocation2 + $0x28] sm:$0xff] }
 0x27b   : > { %v737_v6 = vld [vmem:[#allocation2 + $0x20] sm:$0xf] }
 0x27c   : > { %v736_v5 = vld [vmem:[#allocation2 + $0x18] sm:$0xf]  ;;  %v735_v9 = vld [vmem:[#allocation2] sm:$0xf]  ;;  %v740_v13 = vpack.c.bf16 %v737_v6, %v734_v0 }
 0x27d   : > { %v739_v12 = vpack.c.bf16 %v736_v5, %v733_v63  ;;  %v738_v14 = vpack.c.bf16 %v735_v9, %v732_v4 }
 0x27e   : > { %v752_v15 = vsel %vm364_vm3, %v740_v13, 0 }
 0x27f   : > { %1131 = vmatprep.subr.msk.bf16.mxu0 %vm364_vm3, %v739_v12  ;;  %v746_v16 = vsel %vm364_vm3, %v738_v14, 0  ;;  %1175 = vmatpush3.bf16.msra.mxu1 %v752_v15  ;;  %v1035_v46 = vpop.permute.xlu1 %1034 }
 0x280   : > { %769 = vmatpush1.bf16.msra.mxu0 %v746_v16  ;;  %1180 = vmatprep.subr.bf16.mxu1 %v1231_v7 }
 0x281   : > { %1135 = vmatprep.subr.msk.bf16.mxu0 %vm364_vm3, %v739_v12 }
 0x282   : > { %1177 = vmatmul.mubr.msk.bf16.vlgmr.msra.gmra.mxu1 %vm360_vm4, %v741_v17 }
 0x283   : > { %1132 = vmatmul.mubr.msk.bf16.vlgmr.msra.gmra.mxu0 %vm360_vm4, %v741_v17  ;;  %1181 = vmatpush3.bf16.msra.mxu1 %v752_v15 }
 0x284   : > { %855 = vmatpush1.bf16.msra.mxu0 %v746_v16  ;;  %872 = vmatprep.mubr.bf16.mxu0 %v1232_v8 }
 0x285   : > { %1139 = vmatprep.subr.msk.bf16.mxu0 %vm364_vm3, %v739_v12  ;;  %1182 = vmatprep.mubr.msk.bf16.mxu1 %vm1233_vm0, %v1231_v7 }
 0x286   : > { %1186 = vmatprep.subr.bf16.mxu1 %v1231_v7 }
 0x28a   : > { %1183 = vmatmul.mubr.msk.bf16.vlgmr.msra.gmra.mxu1 %vm360_vm4, %v1134_v18 }
 0x28b   : > { %1136 = vmatmul.mubr.msk.bf16.vlgmr.msra.gmra.mxu0 %vm360_vm4, %v1134_v18  ;;  %1187 = vmatpush3.bf16.msra.mxu1 %v752_v15 }
 0x28c   : > { %941 = vmatpush1.bf16.msra.mxu0 %v746_v16  ;;  %958 = vmatprep.mubr.bf16.mxu0 %v1232_v8 }
 0x28d   : > { %1188 = vmatprep.mubr.msk.bf16.mxu1 %vm1233_vm0, %v1231_v7 }
 0x292   : > { %1189 = vmatmul.mubr.msk.bf16.vlgmr.msra.gmra.mxu1 %vm360_vm4, %v1138_v19 }
 0x293   : > { %1140 = vmatmul.mubr.msk.bf16.vlgmr.msra.gmra.mxu0 %vm360_vm4, %v1138_v19 }
 0x342   : > { %v829_v21 = vpop.f32.mrf.mxu1 }
 0x343   : > { %v788_v20 = vpop.f32.mrf.mxu0 }
 0x344   : > { %1007 = vrot.lane.b32.xlu0 %v788_v20, %s1234_s21  ;;  %v1178_v23 = vpop.f32.mrf.mxu1 }
 0x345   : > { %v790_v22 = vpop.f32.mrf.mxu0 }
 0x346   : > { %1009 = vrot.lane.b32.xlu1 %v790_v22, %s1234_s21  ;;  %v832_v24 = vpop.f32.mrf.mxu1 }
 0x347   : > { %v792_v8 = vpop.f32.mrf.mxu0 }
 0x348   : > { %1011 = vrot.lane.b32.xlu0 %v829_v21, %s1234_s21  ;;  %v1179_v25 = vpop.f32.mrf.mxu1 }
 0x349   : > { %v793_v7 = vpop.f32.mrf.mxu0 }
 0x34a   : > { %v915_v27 = vpop.f32.mrf.mxu1 }
 0x34b   : > { %v874_v26 = vpop.f32.mrf.mxu0 }
 0x34c   : > { %v1184_v29 = vpop.f32.mrf.mxu1 }
 0x34d   : > { %v876_v28 = vpop.f32.mrf.mxu0 }
 0x34e   : > { %v918_v31 = vpop.f32.mrf.mxu1 }
 0x34f   : > { %v878_v30 = vpop.f32.mrf.mxu0 }
 0x350   : > { %v1185_v33 = vpop.f32.mrf.mxu1 }
 0x351   : > { %v879_v32 = vpop.f32.mrf.mxu0 }
 0x352   : > { %v1001_v35 = vpop.f32.mrf.mxu1 }
 0x353   : > { %v960_v34 = vpop.f32.mrf.mxu0 }
 0x354   : > { %1019 = vrot.lane.b32.xlu0 %v960_v34, %s1235_s22  ;;  %v1190_v37 = vpop.f32.mrf.mxu1 }
 0x355   : > { %v962_v36 = vpop.f32.mrf.mxu0 }
 0x356   : > { %1021 = vrot.lane.b32.xlu1 %v962_v36, %s1235_s22  ;;  %v1004_v41 = vpop.f32.mrf.mxu1 }
 0x357   : > { %v964_v38 = vpop.f32.mrf.mxu0 }
 0x358   : > { %1023 = vrot.lane.b32.xlu0 %v1001_v35, %s1235_s22  ;;  %v1191_v44 = vpop.f32.mrf.mxu1 }
 0x359   : > { %v965_v42 = vpop.f32.mrf.mxu0 }
 0x35a   : > { %1043 = vperm.xlu1 %1219, %v1040_v40  }
 0x3b6   : > { %v1008_v45 = vpop.permute.xlu0 %1007 }
 0x3b8   : > { %v1010_v48 = vpop.permute.xlu1 %1009 }
 0x3b9   : > { %v1014_v52 = vsel %vm633_vm5, %v1008_v45, %v1010_v48 }
 0x3ba   : > { %v1012_v47 = vpop.permute.xlu0 %1011  ;;  %v1017_v55 = vadd.f32 %v1014_v52, %v876_v28 }
 0x3bb   : > { %v1013_v1 = vsel %vm633_vm5, %v1010_v48, %v1012_v47  ;;  %v1015_v2 = vsel %vm633_vm5, %v1012_v47, %v1008_v45 }
 0x3bc   : > { %v1016_v56 = vadd.f32 %v1015_v2, %v874_v26  ;;  %v1018_v57 = vadd.f32 %v1013_v1, %v915_v27 }
 0x3c6   : > { %v1020_v49 = vpop.permute.xlu0 %1019 }
 0x3c8   : > { %v1022_v50 = vpop.permute.xlu1 %1021 }
 0x3c9   : > { %v1026_v3 = vsel %vm646_vm6, %v1020_v49, %v1022_v50 }
 0x3ca   : > { %v1024_v51 = vpop.permute.xlu0 %1023  ;;  %v1028_v58 = vadd.f32 %v1026_v3, %v1016_v56 }
 0x3cb   : > { %v1025_v53 = vsel %vm646_vm6, %v1022_v50, %v1024_v51  ;;  %v1027_v54 = vsel %vm646_vm6, %v1024_v51, %v1020_v49 }
 0x3cc   : > { %v1029_v59 = vadd.f32 %v1025_v53, %v1017_v55  ;;  %v1030_v60 = vadd.f32 %v1027_v54, %v1018_v57  ;;  %v1037_v61 = vmul.f32 %v1035_v46, %v1028_v58 }
 0x3ce   : > { %v1038_v62 = vmul.f32 %v1035_v46, %v1029_v59  ;;  %v1039_v63 = vmul.f32 %v1035_v46, %v1030_v60 }
 0x3d5   : > { %v1044_v0 = vpop.permute.xlu1 %1043 }
 0x3d6   : > { %v1046_v4 = vadd.f32 %v1044_v0, %v1037_v61  ;;  %v1047_v5 = vadd.f32 %v1044_v0, %v1038_v62  ;;  %v1048_v6 = vadd.f32 %v1044_v0, %v1039_v63 }
 0x3d8   : > { %v1049_v9 = vmax.f32 %v1046_v4, 0.0  ;;  %v1050_v12 = vmax.f32 %v1047_v5, 0.0  ;;  %v1051_v13 = vmax.f32 %v1048_v6, 0.0 }
 0x3da   : > { %v1052_v11 = vmul.f32 %v1049_v9, %v1405_v43  ;;  %v1053_v14 = vmul.f32 %v1050_v12, %v1403_v10  ;;  %v1054_v15 = vmul.f32 %v1051_v13, %v1401_v39 }
 0x3dc   : > { %1055 = vst [vmem:[%s305_s20] sm:$0xff] %v1052_v11  ;;  %1056 = vst [vmem:[%s305_s20 + $0x8] sm:$0xff] %v1053_v14 }
 0x3dd   : > { %1057 = vst [vmem:[%s305_s20 + $0x10] sm:$0xff] %v1054_v15 }
 0x3de PF: > { %s18_s27 = sadd.s32 1, %s1227_s27  }
 0x3df   : > { %p15_p4 = scmp.ge.s32.totalorder %s18_s27, 4  }
 0x3e1   :  { %17 = sbr.rel (!%p15_p4) target bundleno = 1 (0x1), region = 86 }

</bundles_post_ra>
